<compile_context>
chip_gen: v7x
topology: tpu7x:2x2x1
jax: 0.10.0
libtpu: 0.0.40
codegen_flags: <defaults>
</compile_context>

<pallas_src>
import jax
import jax.numpy as jnp
from jax.experimental import pallas as pl
from jax.experimental.pallas import tpu as pltpu

INPUT_DIM = 1
OUTPUT_DIM = 1

_LANE = 128              # vreg lane width (fast axis)
_SUBLANE = 8             # f32 sublane count
_MAX_BLOCK_ROWS = 8192   # 4 MiB/buffer; 2x in + 2x out double-buffers ~= 16 MiB VMEM
_MIN_BLOCK_ROWS = 512    # don't shrink below ~256 KiB just to manufacture grid steps
_TARGET_GRID_STEPS = 4   # >= 2 pipelined steps per TensorCore on v7x megacore


def _round_up(a, m):
    return (a + m - 1) // m * m


def _pick_block_rows(rows):
    """Block rows: multiple of 8 (or == rows), VMEM-capped, >= ~4 grid steps for big N."""
    if rows <= _SUBLANE:
        return rows  # block == full array dim (allowed even if not a multiple of 8)
    br = _round_up(pl.cdiv(rows, _TARGET_GRID_STEPS), _SUBLANE)
    br = max(min(br, _MAX_BLOCK_ROWS), _MIN_BLOCK_ROWS)
    return min(br, _round_up(rows, _SUBLANE))


def _scale_shift_kernel(w_ref, b_ref, x_ref, o_ref):
    # w_ref / b_ref: (1,) f32 scalars in SMEM.  x_ref / o_ref: (block_rows, 128) f32 in VMEM.
    # Pure VPU multiply-add (scalar splat); no MXU / XLU traffic.
    o_ref[...] = x_ref[...] * w_ref[0] + b_ref[0]


def linear_regression_forward(x, weight, bias):
    """Forward of nn.Linear(1, 1): returns x @ weight.T + bias with shape (N, 1).

    x:      (N, 1) float32
    weight: (1, 1) float32  (torch.nn.Linear convention: (out_dim, in_dim))
    bias:   (1,)   float32
    """
    n, in_dim = x.shape
    out_dim, w_in = weight.shape
    assert in_dim == INPUT_DIM and out_dim == OUTPUT_DIM and w_in == INPUT_DIM

    w_s = weight.reshape(1)
    b_s = bias.reshape(1)

    x_flat = x.reshape(-1)
    rows = n // _LANE          # number of full 128-element rows
    bulk = rows * _LANE        # 128-aligned element count handled by the kernel

    pieces = []

    if rows > 0:
        # Copy-free view when n % 128 == 0; otherwise a leading slice of the aligned bulk.
        x_slab = x_flat[:bulk].reshape(rows, _LANE)
        block_rows = _pick_block_rows(rows)
        grid = (pl.cdiv(rows, block_rows),)

        y_slab = pl.pallas_call(
            _scale_shift_kernel,
            out_shape=jax.ShapeDtypeStruct((rows, _LANE), x.dtype),
            grid=grid,
            in_specs=[
                pl.BlockSpec(memory_space=pltpu.MemorySpace.SMEM),   # weight scalar
                pl.BlockSpec(memory_space=pltpu.MemorySpace.SMEM),   # bias scalar
                pl.BlockSpec((block_rows, _LANE), lambda i: (i, 0)),
            ],
            out_specs=pl.BlockSpec((block_rows, _LANE), lambda i: (i, 0)),
            compiler_params=pltpu.CompilerParams(
                dimension_semantics=("parallel",),
            ),
        )(w_s, b_s, x_slab)

        y_bulk = y_slab.reshape(bulk, OUTPUT_DIM)
        if bulk == n:
            return y_bulk     # fully aligned: no pad, no slice, no concat
        pieces.append(y_bulk)

    if bulk < n:
        # < 128-element ragged tail: cheaper in plain JAX than padding the whole array.
        y_tail = (x_flat[bulk:] * w_s[0] + b_s[0]).reshape(-1, OUTPUT_DIM)
        pieces.append(y_tail)

    return pieces[0] if len(pieces) == 1 else jnp.concatenate(pieces, axis=0)


if __name__ == "__main__":
    key = jax.random.PRNGKey(0)
    kx, kw, kb = jax.random.split(key, 3)

    # Small batch of scalar samples (input_dim = 1): 8 full 128-lane rows plus a
    # 3-element ragged tail, so both the Pallas bulk path and the JAX tail path run.
    N = 8 * _LANE + 3
    x = jax.random.normal(kx, (N, INPUT_DIM), dtype=jnp.float32)

    # Deterministic parameter init (mimics nn.Linear's uniform(-1/sqrt(fan_in), ...) range).
    bound = 1.0 / (INPUT_DIM ** 0.5)
    weight = jax.random.uniform(
        kw, (OUTPUT_DIM, INPUT_DIM), dtype=jnp.float32, minval=-bound, maxval=bound
    )
    bias = jax.random.uniform(
        kb, (OUTPUT_DIM,), dtype=jnp.float32, minval=-bound, maxval=bound
    )

    fwd = jax.jit(linear_regression_forward)
    y = fwd(x, weight, bias)
    jax.block_until_ready(y)

    # Reference check against plain JAX (same math as nn.Linear forward).
    y_ref = x @ weight.T + bias
    assert y.shape == (N, OUTPUT_DIM)
    assert jnp.allclose(y, y_ref, atol=1e-5, rtol=1e-5)

    print("KERNEL_OK")
</pallas_src>

<mosaic_0001>
module attributes {stable_mosaic.version = 11 : i64} {
  func.func @_scale_shift_kernel(%arg0: i32, %arg1: memref<1xf32, #tpu.memory_space<smem>>, %arg2: memref<1xf32, #tpu.memory_space<smem>>, %arg3: memref<8x128xf32, #tpu.memory_space<vmem>>, %arg4: memref<8x128xf32, #tpu.memory_space<vmem>>) attributes {dimension_semantics = [#tpu.dimension_semantics<parallel>], iteration_bounds = array<i64: 1>, scalar_prefetch = 0 : i64, scratch_operands = 0 : i64, tpu.core_type = #tpu.core_type<tc>, window_params = [{transform_indices = @transform_0, window_bounds = array<i64: 1>}, {transform_indices = @transform_1, window_bounds = array<i64: 1>}, {transform_indices = @transform_2, window_bounds = array<i64: 8, 128>}, {transform_indices = @transform_3, window_bounds = array<i64: 8, 128>}]} {
    %c0 = arith.constant 0 : index
    %c0_0 = arith.constant 0 : index
    %0 = vector.load %arg3[%c0, %c0_0] : memref<8x128xf32, #tpu.memory_space<vmem>>, vector<8x128xf32>
    %c0_1 = arith.constant 0 : index
    %1 = memref.load %arg1[%c0_1] : memref<1xf32, #tpu.memory_space<smem>>
    %2 = vector.broadcast %1 : f32 to vector<8x128xf32>
    %3 = arith.mulf %0, %2 : vector<8x128xf32>
    %c0_2 = arith.constant 0 : index
    %4 = memref.load %arg2[%c0_2] : memref<1xf32, #tpu.memory_space<smem>>
    %5 = vector.broadcast %4 : f32 to vector<8x128xf32>
    %6 = arith.addf %3, %5 : vector<8x128xf32>
    %c0_3 = arith.constant 0 : index
    %c0_4 = arith.constant 0 : index
    %7 = vector.load %arg4[%c0_3, %c0_4] : memref<8x128xf32, #tpu.memory_space<vmem>>, vector<8x128xf32>
    tpu.vector_store %arg4[%c0_3, %c0_4], %6 {strides = array<i32>} : memref<8x128xf32, #tpu.memory_space<vmem>>, vector<8x128xf32>,
    return
  }
  func.func @transform_0(%arg0: i32) -> i32 {
    %c0_i32 = arith.constant 0 : i32
    %c0_i32_0 = arith.constant 0 : i32
    return %c0_i32 : i32
  }
  func.func @transform_1(%arg0: i32) -> i32 {
    %c0_i32 = arith.constant 0 : i32
    %c0_i32_0 = arith.constant 0 : i32
    return %c0_i32 : i32
  }
  func.func @transform_2(%arg0: i32) -> (i32, i32) {
    %c0_i32 = arith.constant 0 : i32
    %c0_i32_0 = arith.constant 0 : i32
    return %arg0, %c0_i32 : i32, i32
  }
  func.func @transform_3(%arg0: i32) -> (i32, i32) {
    %c0_i32 = arith.constant 0 : i32
    %c0_i32_0 = arith.constant 0 : i32
    return %arg0, %c0_i32 : i32, i32
  }
}

</mosaic_0001>

<bundles_post_ra>
// kernel: linear_regression_forward.1
= control target key start
LH: loop header
LB: loop body
LE: loop exit
PB: predicated region body
PF: predicated region fallthrough
CT: control target
= control target key end

     0   :  { %s60_s0 = inlined_call_operand.<no memory space> [shape: f32[1], index: 0, kind: input, shape index: {}]   ;;  %s61_s1 = inlined_call_operand.<no memory space> [shape: f32[1], index: 1, kind: input, shape index: {}]   ;;  %s62_s2 = inlined_call_operand.vmem [shape: f32[8,128], index: 2, kind: input, shape index: {}]   ;;  %s63_s3 = inlined_call_operand.vmem [shape: f32[8,128], index: 3, kind: output, shape index: {}]  }
   0x1   :  { %v16_v0 = vld [vmem:[%s62_s2] sm:$0xff]  ;;  %v18_v1 = vstv %s60_s0  ;;  %v21_v2 = vstv %s61_s1 }
   0x2   :  { %v19_v3 = vmul.f32 %v18_v1, %v16_v0 }
   0x4   :  { %v22_v4 = vadd.f32 %v21_v2, %v19_v3 }
   0x6   :  { %23 = vst [vmem:[%s63_s3] sm:$0xff] %v22_v4 }

</bundles_post_ra>
